<compile_context>
chip_gen: v6e
topology: v6e:2x2x1
jax: 0.10.0
libtpu: 0.0.40
codegen_flags: <defaults>
</compile_context>

<pallas_src>
import functools

import numpy as np
import jax
import jax.numpy as jnp
from jax import lax
from jax.experimental import pallas as pl
from jax.experimental.pallas import tpu as pltpu


# --------------------------------------------------------------------------- #
# Kernel 1: prompt assembly (row gather from HBM + ctx splice)                 #
# --------------------------------------------------------------------------- #
def _assemble_prompts_kernel(tok_ref, emb_ref, ctx_ref, out_ref, copy_sem, *,
                             n_ctx, block_cls, seq_len):
    """One grid step assembles `block_cls` captions.

    tok_ref  : (n_cls, seq_len) int32, SMEM (scalar prefetch)  -- token ids
    emb_ref  : (vocab, ctx_dim), HBM / ANY                      -- embedding table
    ctx_ref  : (n_ctx, ctx_dim), VMEM                           -- learned context
    out_ref  : (block_cls, seq_len, ctx_dim), VMEM              -- assembled prompts
    copy_sem : DMA semaphore shared by all row-gather copies
    """
    i = pl.program_id(0)
    base = i * block_cls
    ctx_dim = out_ref.shape[-1]
    n_gather = seq_len - n_ctx            # prefix row + suffix rows per caption
    total = block_cls * n_gather

    # 1) Issue every gather DMA first (pure descriptor pushes: HBM row -> output
    #    tile row).  Destination positions are static (inner Python unroll), only
    #    the caption index and the token id are dynamic, so there is no div/mod
    #    address arithmetic on the scalar unit.
    #    NOTE: out-of-range token ids would fault the (bounds-checked) DMA instead
    #    of silently producing zeros like a one-hot matmul would.
    def _issue_caption(b, carry):
        for g in range(n_gather):                     # static inner unroll
            s = 0 if g == 0 else n_ctx + g            # 0, 1+n_ctx, ..., seq_len-1
            tok = tok_ref[base + b, s]
            pltpu.make_async_copy(emb_ref.at[tok], out_ref.at[b, s], copy_sem).start()
        return carry

    lax.fori_loop(0, block_cls, _issue_caption, 0)

    # 2) Learned ctx rows [1, 1+n_ctx): vector store from VMEM.  Runs while the
    #    gather DMAs are in flight (disjoint rows of the output tile).
    ctx_block = jnp.broadcast_to(ctx_ref[...][None, :, :], (block_cls, n_ctx, ctx_dim))
    out_ref[:, pl.ds(1, n_ctx), :] = ctx_block.astype(out_ref.dtype)

    # 3) Drain.  Every copy moves one (ctx_dim,) row, so waiting `total` times
    #    with an equal-sized descriptor on the shared semaphore drains all of them.
    def _drain(idx, carry):
        pltpu.make_async_copy(emb_ref.at[0], out_ref.at[0, 0], copy_sem).wait()
        return carry

    lax.fori_loop(0, total, _drain, 0)


def _pick_block_cls(n_cls, seq_len, ctx_dim, itemsize, vmem_budget_bytes=8 << 20):
    """Caption batch per grid step: smallest divisor of n_cls giving >=128 sublanes
    per output tile (lane/sublane-dense stores), subject to a VMEM budget."""
    divisors = [d for d in range(1, n_cls + 1) if n_cls % d == 0]
    fitting = [d for d in divisors
               if 2 * d * seq_len * ctx_dim * itemsize <= vmem_budget_bytes]
    if not fitting:
        return 1
    dense = [d for d in fitting if d * seq_len >= 128]
    return min(dense) if dense else max(fitting)


def _assemble_prompts(tokenized_prompts, token_embedding, ctx, *, block_cls=None):
    n_cls, seq_len = tokenized_prompts.shape
    vocab, ctx_dim = token_embedding.shape
    n_ctx = ctx.shape[0]
    itemsize = jnp.dtype(token_embedding.dtype).itemsize
    if block_cls is None:
        block_cls = _pick_block_cls(n_cls, seq_len, ctx_dim, itemsize)
    assert n_cls % block_cls == 0

    # Per-step VMEM working set: double-buffered output tile + ctx block (the
    # embedding table never enters VMEM).  Generous headroom, clamped under the
    # 64 MiB physical ceiling of v7x.
    working = (2 * block_cls * seq_len * ctx_dim * itemsize
               + 2 * n_ctx * ctx_dim * itemsize)
    vmem_limit = int(min(64 << 20, max(16 << 20, 4 * working)))

    kernel = functools.partial(_assemble_prompts_kernel, n_ctx=n_ctx,
                               block_cls=block_cls, seq_len=seq_len)
    return pl.pallas_call(
        kernel,
        out_shape=jax.ShapeDtypeStruct((n_cls, seq_len, ctx_dim), token_embedding.dtype),
        grid_spec=pltpu.PrefetchScalarGridSpec(
            num_scalar_prefetch=1,                      # token ids -> SMEM
            grid=(n_cls // block_cls,),
            in_specs=[
                pl.BlockSpec(memory_space=pl.ANY),      # embedding table stays in HBM
                pl.BlockSpec((n_ctx, ctx_dim), lambda i, tok: (0, 0)),
            ],
            out_specs=pl.BlockSpec((block_cls, seq_len, ctx_dim),
                                   lambda i, tok: (i, 0, 0)),
            scratch_shapes=[pltpu.SemaphoreType.DMA],   # shared row-gather semaphore
        ),
        compiler_params=pltpu.CompilerParams(
            dimension_semantics=("parallel",),          # captions are independent
            vmem_limit_bytes=vmem_limit,
        ),
    )(tokenized_prompts.astype(jnp.int32), token_embedding,
      ctx.astype(token_embedding.dtype))


# --------------------------------------------------------------------------- #
# Kernel 2: batched linear projections (proj(ctx) + compound projections)      #
# --------------------------------------------------------------------------- #
def _batched_linear_kernel(x_ref, w_ref, b_ref, o_ref):
    """y = x @ w + b for one depth slice. x:(1,n,cin) w:(1,cin,cout) b:(1,1,cout)."""
    y = jnp.dot(x_ref[0], w_ref[0], preferred_element_type=jnp.float32) + b_ref[0]
    o_ref[0] = y.astype(o_ref.dtype)


def _project_prompts(ctx, proj_w, proj_b, compound_prompts_text,
                     compound_proj_ws, compound_proj_bs):
    xs = jnp.stack([ctx] + list(compound_prompts_text)).astype(jnp.float32)
    ws = jnp.stack([proj_w.T] + [w.T for w in compound_proj_ws]).astype(jnp.float32)
    bs = jnp.stack([proj_b] + list(compound_proj_bs)).astype(jnp.float32)[:, None, :]
    depth, n, cin = xs.shape
    cout = ws.shape[-1]

    # Pad the tiny n_ctx rows up to a sublane multiple so every tile is aligned.
    n_pad = ((n + 7) // 8) * 8
    if n_pad != n:
        xs = jnp.pad(xs, ((0, 0), (0, n_pad - n), (0, 0)))

    out = pl.pallas_call(
        _batched_linear_kernel,
        out_shape=jax.ShapeDtypeStruct((depth, n_pad, cout), jnp.float32),
        grid_spec=pltpu.PrefetchScalarGridSpec(
            num_scalar_prefetch=0,
            grid=(depth,),
            in_specs=[
                pl.BlockSpec((1, n_pad, cin), lambda d: (d, 0, 0)),
                pl.BlockSpec((1, cin, cout), lambda d: (d, 0, 0)),
                pl.BlockSpec((1, 1, cout), lambda d: (d, 0, 0)),
            ],
            out_specs=pl.BlockSpec((1, n_pad, cout), lambda d: (d, 0, 0)),
        ),
        compiler_params=pltpu.CompilerParams(dimension_semantics=("parallel",)),
    )(xs, ws, bs)
    return out[:, :n, :]


# --------------------------------------------------------------------------- #
# forward() wrapper mirroring MultiModalPromptLearner.forward                  #
# --------------------------------------------------------------------------- #
def multimodal_prompt_learner_forward(tokenized_prompts, token_embedding, ctx,
                                      proj_w, proj_b,
                                      compound_prompts_text,
                                      compound_proj_ws, compound_proj_bs,
                                      block_cls=None):
    """Returns (prompts, proj(ctx), compound_prompts_text, visual_deep_prompts)."""
    prompts = _assemble_prompts(tokenized_prompts, token_embedding, ctx,
                                block_cls=block_cls)
    projected = _project_prompts(ctx, proj_w, proj_b, compound_prompts_text,
                                 compound_proj_ws, compound_proj_bs)
    proj_ctx = projected[0]
    visual_deep_prompts = [projected[1 + i] for i in range(len(compound_prompts_text))]
    return prompts, proj_ctx, list(compound_prompts_text), visual_deep_prompts


if __name__ == "__main__":
    # n_cls matches the module's 14 classnames; other dims kept small
    # (real CLIP: seq_len=77, ctx_dim=512, vis_dim=768, vocab=49408).
    n_cls, seq_len, n_ctx = 14, 16, 4
    ctx_dim, vis_dim, vocab = 128, 256, 512
    prompt_depth = 3                      # cfg.TRAINER.MAPLE.PROMPT_DEPTH

    key = jax.random.PRNGKey(0)
    ks = jax.random.split(key, 6 + 3 * (prompt_depth - 1))

    token_embedding = (0.02 * jax.random.normal(ks[0], (vocab, ctx_dim))).astype(jnp.float32)
    ctx = (0.02 * jax.random.normal(ks[1], (n_ctx, ctx_dim))).astype(jnp.float32)
    tokenized_prompts = jax.random.randint(ks[2], (n_cls, seq_len), 0, vocab, dtype=jnp.int32)
    proj_w = (0.02 * jax.random.normal(ks[3], (vis_dim, ctx_dim))).astype(jnp.float32)
    proj_b = (0.02 * jax.random.normal(ks[4], (vis_dim,))).astype(jnp.float32)

    compound_prompts_text, comp_ws, comp_bs = [], [], []
    for i in range(prompt_depth - 1):
        compound_prompts_text.append(
            (0.02 * jax.random.normal(ks[5 + 3 * i], (n_ctx, ctx_dim))).astype(jnp.float32))
        comp_ws.append(
            (0.02 * jax.random.normal(ks[6 + 3 * i], (vis_dim, ctx_dim))).astype(jnp.float32))
        comp_bs.append(
            (0.02 * jax.random.normal(ks[7 + 3 * i], (vis_dim,))).astype(jnp.float32))

    prompts, proj_ctx, text_prompts_out, visual_deep = multimodal_prompt_learner_forward(
        tokenized_prompts, token_embedding, ctx, proj_w, proj_b,
        compound_prompts_text, comp_ws, comp_bs)
    prompts = jax.block_until_ready(prompts)
    proj_ctx = jax.block_until_ready(proj_ctx)
    visual_deep = [jax.block_until_ready(v) for v in visual_deep]

    # ---- pure-JAX reference of the PyTorch forward semantics ----
    emb = token_embedding[tokenized_prompts]                          # (n_cls, S, D)
    prefix = emb[:, :1, :]
    suffix = emb[:, 1 + n_ctx:, :]
    ctx_b = jnp.broadcast_to(ctx[None], (n_cls, n_ctx, ctx_dim))
    prompts_ref = jnp.concatenate([prefix, ctx_b, suffix], axis=1)

    hi = jax.lax.Precision.HIGHEST
    proj_ref = jnp.dot(ctx, proj_w.T, precision=hi) + proj_b
    vis_refs = [jnp.dot(t, w.T, precision=hi) + b
                for t, w, b in zip(compound_prompts_text, comp_ws, comp_bs)]

    np.testing.assert_allclose(np.asarray(prompts), np.asarray(prompts_ref),
                               rtol=1e-6, atol=1e-6)
    np.testing.assert_allclose(np.asarray(proj_ctx), np.asarray(proj_ref),
                               rtol=1e-3, atol=1e-5)
    for got, want in zip(visual_deep, vis_refs):
        np.testing.assert_allclose(np.asarray(got), np.asarray(want),
                                   rtol=1e-3, atol=1e-5)
    for got, want in zip(text_prompts_out, compound_prompts_text):
        np.testing.assert_allclose(np.asarray(got), np.asarray(want), rtol=0, atol=0)
    print("KERNEL_OK")
</pallas_src>

<mosaic_0001>
module attributes {stable_mosaic.version = 11 : i64} {
  func.func @_assemble_prompts_kernel(%arg0: i32, %arg1: memref<14x16xi32, #tpu.memory_space<smem>>, %arg2: memref<512x128xf32, #tpu.memory_space<any>>, %arg3: memref<4x128xf32, #tpu.memory_space<vmem>>, %arg4: memref<14x16x128xf32, #tpu.memory_space<vmem>>, %arg5: memref<!tpu.dma_semaphore, #tpu.memory_space<semaphore_mem>>) attributes {dimension_semantics = [#tpu.dimension_semantics<parallel>], iteration_bounds = array<i64: 1>, scalar_prefetch = 1 : i64, scratch_operands = 1 : i64, tpu.core_type = #tpu.core_type<tc>, window_params = [{}, {pipeline_mode = #tpu.pipeline_mode<synchronous>, transform_indices = @transform_1, window_bounds = array<i64: 4, 128>}, {transform_indices = @transform_2, window_bounds = array<i64: 14, 16, 128>}]} {
    %c14_i32 = arith.constant 14 : i32
    %0 = arith.muli %arg0, %c14_i32 : i32
    %c0_i32 = arith.constant 0 : i32
    %c14_i32_0 = arith.constant 14 : i32
    %1 = arith.addi %c0_i32, %c14_i32_0 : i32
    %c1_i32 = arith.constant 1 : i32
    scf.for %arg6 = %c0_i32 to %1 step %c1_i32  : i32 {
      %8 = arith.addi %0, %arg6 : i32
      %9 = arith.index_cast %8 : i32 to index
      %c0_7 = arith.constant 0 : index
      %10 = memref.load %arg1[%9, %c0_7] : memref<14x16xi32, #tpu.memory_space<smem>>
      %c0_i32_8 = arith.constant 0 : i32
      %c0_i32_9 = arith.constant 0 : i32
      %11 = tpu.memref_slice %arg2[%10, %c0_i32_9] : memref<512x128xf32, #tpu.memory_space<any>> -> memref<1x128xf32, #tpu.memory_space<any>>
      %12 = tpu.memref_squeeze %11 : memref<1x128xf32, #tpu.memory_space<any>> -> memref<128xf32, #tpu.memory_space<any>>
      %c0_i32_10 = arith.constant 0 : i32
      %13 = tpu.memref_slice %arg4[%arg6, %c0_i32_8, %c0_i32_10] : memref<14x16x128xf32, #tpu.memory_space<vmem>> -> memref<1x1x128xf32, #tpu.memory_space<vmem>>
      %14 = tpu.memref_squeeze %13 : memref<1x1x128xf32, #tpu.memory_space<vmem>> -> memref<128xf32, #tpu.memory_space<vmem>>
      tpu.enqueue_dma source(%12 : memref<128xf32, #tpu.memory_space<any>>) target(%14 : memref<128xf32, #tpu.memory_space<vmem>>) target_semaphore(%arg5 : memref<!tpu.dma_semaphore, #tpu.memory_space<semaphore_mem>>)
      %15 = arith.addi %0, %arg6 : i32
      %16 = arith.index_cast %15 : i32 to index
      %c5 = arith.constant 5 : index
      %17 = memref.load %arg1[%16, %c5] : memref<14x16xi32, #tpu.memory_space<smem>>
      %c5_i32 = arith.constant 5 : i32
      %c0_i32_11 = arith.constant 0 : i32
      %18 = tpu.memref_slice %arg2[%17, %c0_i32_11] : memref<512x128xf32, #tpu.memory_space<any>> -> memref<1x128xf32, #tpu.memory_space<any>>
      %19 = tpu.memref_squeeze %18 : memref<1x128xf32, #tpu.memory_space<any>> -> memref<128xf32, #tpu.memory_space<any>>
      %c0_i32_12 = arith.constant 0 : i32
      %20 = tpu.memref_slice %arg4[%arg6, %c5_i32, %c0_i32_12] : memref<14x16x128xf32, #tpu.memory_space<vmem>> -> memref<1x1x128xf32, #tpu.memory_space<vmem>>
      %21 = tpu.memref_squeeze %20 : memref<1x1x128xf32, #tpu.memory_space<vmem>> -> memref<128xf32, #tpu.memory_space<vmem>>
      tpu.enqueue_dma source(%19 : memref<128xf32, #tpu.memory_space<any>>) target(%21 : memref<128xf32, #tpu.memory_space<vmem>>) target_semaphore(%arg5 : memref<!tpu.dma_semaphore, #tpu.memory_space<semaphore_mem>>)
      %22 = arith.addi %0, %arg6 : i32
      %23 = arith.index_cast %22 : i32 to index
      %c6 = arith.constant 6 : index
      %24 = memref.load %arg1[%23, %c6] : memref<14x16xi32, #tpu.memory_space<smem>>
      %c6_i32 = arith.constant 6 : i32
      %c0_i32_13 = arith.constant 0 : i32
      %25 = tpu.memref_slice %arg2[%24, %c0_i32_13] : memref<512x128xf32, #tpu.memory_space<any>> -> memref<1x128xf32, #tpu.memory_space<any>>
      %26 = tpu.memref_squeeze %25 : memref<1x128xf32, #tpu.memory_space<any>> -> memref<128xf32, #tpu.memory_space<any>>
      %c0_i32_14 = arith.constant 0 : i32
      %27 = tpu.memref_slice %arg4[%arg6, %c6_i32, %c0_i32_14] : memref<14x16x128xf32, #tpu.memory_space<vmem>> -> memref<1x1x128xf32, #tpu.memory_space<vmem>>
      %28 = tpu.memref_squeeze %27 : memref<1x1x128xf32, #tpu.memory_space<vmem>> -> memref<128xf32, #tpu.memory_space<vmem>>
      tpu.enqueue_dma source(%26 : memref<128xf32, #tpu.memory_space<any>>) target(%28 : memref<128xf32, #tpu.memory_space<vmem>>) target_semaphore(%arg5 : memref<!tpu.dma_semaphore, #tpu.memory_space<semaphore_mem>>)
      %29 = arith.addi %0, %arg6 : i32
      %30 = arith.index_cast %29 : i32 to index
      %c7 = arith.constant 7 : index
      %31 = memref.load %arg1[%30, %c7] : memref<14x16xi32, #tpu.memory_space<smem>>
      %c7_i32 = arith.constant 7 : i32
      %c0_i32_15 = arith.constant 0 : i32
      %32 = tpu.memref_slice %arg2[%31, %c0_i32_15] : memref<512x128xf32, #tpu.memory_space<any>> -> memref<1x128xf32, #tpu.memory_space<any>>
      %33 = tpu.memref_squeeze %32 : memref<1x128xf32, #tpu.memory_space<any>> -> memref<128xf32, #tpu.memory_space<any>>
      %c0_i32_16 = arith.constant 0 : i32
      %34 = tpu.memref_slice %arg4[%arg6, %c7_i32, %c0_i32_16] : memref<14x16x128xf32, #tpu.memory_space<vmem>> -> memref<1x1x128xf32, #tpu.memory_space<vmem>>
      %35 = tpu.memref_squeeze %34 : memref<1x1x128xf32, #tpu.memory_space<vmem>> -> memref<128xf32, #tpu.memory_space<vmem>>
      tpu.enqueue_dma source(%33 : memref<128xf32, #tpu.memory_space<any>>) target(%35 : memref<128xf32, #tpu.memory_space<vmem>>) target_semaphore(%arg5 : memref<!tpu.dma_semaphore, #tpu.memory_space<semaphore_mem>>)
      %36 = arith.addi %0, %arg6 : i32
      %37 = arith.index_cast %36 : i32 to index
      %c8 = arith.constant 8 : index
      %38 = memref.load %arg1[%37, %c8] : memref<14x16xi32, #tpu.memory_space<smem>>
      %c8_i32 = arith.constant 8 : i32
      %c0_i32_17 = arith.constant 0 : i32
      %39 = tpu.memref_slice %arg2[%38, %c0_i32_17] : memref<512x128xf32, #tpu.memory_space<any>> -> memref<1x128xf32, #tpu.memory_space<any>>
      %40 = tpu.memref_squeeze %39 : memref<1x128xf32, #tpu.memory_space<any>> -> memref<128xf32, #tpu.memory_space<any>>
      %c0_i32_18 = arith.constant 0 : i32
      %41 = tpu.memref_slice %arg4[%arg6, %c8_i32, %c0_i32_18] : memref<14x16x128xf32, #tpu.memory_space<vmem>> -> memref<1x1x128xf32, #tpu.memory_space<vmem>>
      %42 = tpu.memref_squeeze %41 : memref<1x1x128xf32, #tpu.memory_space<vmem>> -> memref<128xf32, #tpu.memory_space<vmem>>
      tpu.enqueue_dma source(%40 : memref<128xf32, #tpu.memory_space<any>>) target(%42 : memref<128xf32, #tpu.memory_space<vmem>>) target_semaphore(%arg5 : memref<!tpu.dma_semaphore, #tpu.memory_space<semaphore_mem>>)
      %43 = arith.addi %0, %arg6 : i32
      %44 = arith.index_cast %43 : i32 to index
      %c9 = arith.constant 9 : index
      %45 = memref.load %arg1[%44, %c9] : memref<14x16xi32, #tpu.memory_space<smem>>
      %c9_i32 = arith.constant 9 : i32
      %c0_i32_19 = arith.constant 0 : i32
      %46 = tpu.memref_slice %arg2[%45, %c0_i32_19] : memref<512x128xf32, #tpu.memory_space<any>> -> memref<1x128xf32, #tpu.memory_space<any>>
      %47 = tpu.memref_squeeze %46 : memref<1x128xf32, #tpu.memory_space<any>> -> memref<128xf32, #tpu.memory_space<any>>
      %c0_i32_20 = arith.constant 0 : i32
      %48 = tpu.memref_slice %arg4[%arg6, %c9_i32, %c0_i32_20] : memref<14x16x128xf32, #tpu.memory_space<vmem>> -> memref<1x1x128xf32, #tpu.memory_space<vmem>>
      %49 = tpu.memref_squeeze %48 : memref<1x1x128xf32, #tpu.memory_space<vmem>> -> memref<128xf32, #tpu.memory_space<vmem>>
      tpu.enqueue_dma source(%47 : memref<128xf32, #tpu.memory_space<any>>) target(%49 : memref<128xf32, #tpu.memory_space<vmem>>) target_semaphore(%arg5 : memref<!tpu.dma_semaphore, #tpu.memory_space<semaphore_mem>>)
      %50 = arith.addi %0, %arg6 : i32
      %51 = arith.index_cast %50 : i32 to index
      %c10 = arith.constant 10 : index
      %52 = memref.load %arg1[%51, %c10] : memref<14x16xi32, #tpu.memory_space<smem>>
      %c10_i32 = arith.constant 10 : i32
      %c0_i32_21 = arith.constant 0 : i32
      %53 = tpu.memref_slice %arg2[%52, %c0_i32_21] : memref<512x128xf32, #tpu.memory_space<any>> -> memref<1x128xf32, #tpu.memory_space<any>>
      %54 = tpu.memref_squeeze %53 : memref<1x128xf32, #tpu.memory_space<any>> -> memref<128xf32, #tpu.memory_space<any>>
      %c0_i32_22 = arith.constant 0 : i32
      %55 = tpu.memref_slice %arg4[%arg6, %c10_i32, %c0_i32_22] : memref<14x16x128xf32, #tpu.memory_space<vmem>> -> memref<1x1x128xf32, #tpu.memory_space<vmem>>
      %56 = tpu.memref_squeeze %55 : memref<1x1x128xf32, #tpu.memory_space<vmem>> -> memref<128xf32, #tpu.memory_space<vmem>>
      tpu.enqueue_dma source(%54 : memref<128xf32, #tpu.memory_space<any>>) target(%56 : memref<128xf32, #tpu.memory_space<vmem>>) target_semaphore(%arg5 : memref<!tpu.dma_semaphore, #tpu.memory_space<semaphore_mem>>)
      %57 = arith.addi %0, %arg6 : i32
      %58 = arith.index_cast %57 : i32 to index
      %c11 = arith.constant 11 : index
      %59 = memref.load %arg1[%58, %c11] : memref<14x16xi32, #tpu.memory_space<smem>>
      %c11_i32 = arith.constant 11 : i32
      %c0_i32_23 = arith.constant 0 : i32
      %60 = tpu.memref_slice %arg2[%59, %c0_i32_23] : memref<512x128xf32, #tpu.memory_space<any>> -> memref<1x128xf32, #tpu.memory_space<any>>
      %61 = tpu.memref_squeeze %60 : memref<1x128xf32, #tpu.memory_space<any>> -> memref<128xf32, #tpu.memory_space<any>>
      %c0_i32_24 = arith.constant 0 : i32
      %62 = tpu.memref_slice %arg4[%arg6, %c11_i32, %c0_i32_24] : memref<14x16x128xf32, #tpu.memory_space<vmem>> -> memref<1x1x128xf32, #tpu.memory_space<vmem>>
      %63 = tpu.memref_squeeze %62 : memref<1x1x128xf32, #tpu.memory_space<vmem>> -> memref<128xf32, #tpu.memory_space<vmem>>
      tpu.enqueue_dma source(%61 : memref<128xf32, #tpu.memory_space<any>>) target(%63 : memref<128xf32, #tpu.memory_space<vmem>>) target_semaphore(%arg5 : memref<!tpu.dma_semaphore, #tpu.memory_space<semaphore_mem>>)
      %64 = arith.addi %0, %arg6 : i32
      %65 = arith.index_cast %64 : i32 to index
      %c12 = arith.constant 12 : index
      %66 = memref.load %arg1[%65, %c12] : memref<14x16xi32, #tpu.memory_space<smem>>
      %c12_i32 = arith.constant 12 : i32
      %c0_i32_25 = arith.constant 0 : i32
      %67 = tpu.memref_slice %arg2[%66, %c0_i32_25] : memref<512x128xf32, #tpu.memory_space<any>> -> memref<1x128xf32, #tpu.memory_space<any>>
      %68 = tpu.memref_squeeze %67 : memref<1x128xf32, #tpu.memory_space<any>> -> memref<128xf32, #tpu.memory_space<any>>
      %c0_i32_26 = arith.constant 0 : i32
      %69 = tpu.memref_slice %arg4[%arg6, %c12_i32, %c0_i32_26] : memref<14x16x128xf32, #tpu.memory_space<vmem>> -> memref<1x1x128xf32, #tpu.memory_space<vmem>>
      %70 = tpu.memref_squeeze %69 : memref<1x1x128xf32, #tpu.memory_space<vmem>> -> memref<128xf32, #tpu.memory_space<vmem>>
      tpu.enqueue_dma source(%68 : memref<128xf32, #tpu.memory_space<any>>) target(%70 : memref<128xf32, #tpu.memory_space<vmem>>) target_semaphore(%arg5 : memref<!tpu.dma_semaphore, #tpu.memory_space<semaphore_mem>>)
      %71 = arith.addi %0, %arg6 : i32
      %72 = arith.index_cast %71 : i32 to index
      %c13 = arith.constant 13 : index
      %73 = memref.load %arg1[%72, %c13] : memref<14x16xi32, #tpu.memory_space<smem>>
      %c13_i32 = arith.constant 13 : i32
      %c0_i32_27 = arith.constant 0 : i32
      %74 = tpu.memref_slice %arg2[%73, %c0_i32_27] : memref<512x128xf32, #tpu.memory_space<any>> -> memref<1x128xf32, #tpu.memory_space<any>>
      %75 = tpu.memref_squeeze %74 : memref<1x128xf32, #tpu.memory_space<any>> -> memref<128xf32, #tpu.memory_space<any>>
      %c0_i32_28 = arith.constant 0 : i32
      %76 = tpu.memref_slice %arg4[%arg6, %c13_i32, %c0_i32_28] : memref<14x16x128xf32, #tpu.memory_space<vmem>> -> memref<1x1x128xf32, #tpu.memory_space<vmem>>
      %77 = tpu.memref_squeeze %76 : memref<1x1x128xf32, #tpu.memory_space<vmem>> -> memref<128xf32, #tpu.memory_space<vmem>>
      tpu.enqueue_dma source(%75 : memref<128xf32, #tpu.memory_space<any>>) target(%77 : memref<128xf32, #tpu.memory_space<vmem>>) target_semaphore(%arg5 : memref<!tpu.dma_semaphore, #tpu.memory_space<semaphore_mem>>)
      %78 = arith.addi %0, %arg6 : i32
      %79 = arith.index_cast %78 : i32 to index
      %c14 = arith.constant 14 : index
      %80 = memref.load %arg1[%79, %c14] : memref<14x16xi32, #tpu.memory_space<smem>>
      %c14_i32_29 = arith.constant 14 : i32
      %c0_i32_30 = arith.constant 0 : i32
      %81 = tpu.memref_slice %arg2[%80, %c0_i32_30] : memref<512x128xf32, #tpu.memory_space<any>> -> memref<1x128xf32, #tpu.memory_space<any>>
      %82 = tpu.memref_squeeze %81 : memref<1x128xf32, #tpu.memory_space<any>> -> memref<128xf32, #tpu.memory_space<any>>
      %c0_i32_31 = arith.constant 0 : i32
      %83 = tpu.memref_slice %arg4[%arg6, %c14_i32_29, %c0_i32_31] : memref<14x16x128xf32, #tpu.memory_space<vmem>> -> memref<1x1x128xf32, #tpu.memory_space<vmem>>
      %84 = tpu.memref_squeeze %83 : memref<1x1x128xf32, #tpu.memory_space<vmem>> -> memref<128xf32, #tpu.memory_space<vmem>>
      tpu.enqueue_dma source(%82 : memref<128xf32, #tpu.memory_space<any>>) target(%84 : memref<128xf32, #tpu.memory_space<vmem>>) target_semaphore(%arg5 : memref<!tpu.dma_semaphore, #tpu.memory_space<semaphore_mem>>)
      %85 = arith.addi %0, %arg6 : i32
      %86 = arith.index_cast %85 : i32 to index
      %c15 = arith.constant 15 : index
      %87 = memref.load %arg1[%86, %c15] : memref<14x16xi32, #tpu.memory_space<smem>>
      %c15_i32 = arith.constant 15 : i32
      %c0_i32_32 = arith.constant 0 : i32
      %88 = tpu.memref_slice %arg2[%87, %c0_i32_32] : memref<512x128xf32, #tpu.memory_space<any>> -> memref<1x128xf32, #tpu.memory_space<any>>
      %89 = tpu.memref_squeeze %88 : memref<1x128xf32, #tpu.memory_space<any>> -> memref<128xf32, #tpu.memory_space<any>>
      %c0_i32_33 = arith.constant 0 : i32
      %90 = tpu.memref_slice %arg4[%arg6, %c15_i32, %c0_i32_33] : memref<14x16x128xf32, #tpu.memory_space<vmem>> -> memref<1x1x128xf32, #tpu.memory_space<vmem>>
      %91 = tpu.memref_squeeze %90 : memref<1x1x128xf32, #tpu.memory_space<vmem>> -> memref<128xf32, #tpu.memory_space<vmem>>
      tpu.enqueue_dma source(%89 : memref<128xf32, #tpu.memory_space<any>>) target(%91 : memref<128xf32, #tpu.memory_space<vmem>>) target_semaphore(%arg5 : memref<!tpu.dma_semaphore, #tpu.memory_space<semaphore_mem>>)
    }
    %c14_i32_1 = arith.constant 14 : i32
    %c0 = arith.constant 0 : index
    %c0_2 = arith.constant 0 : index
    %2 = vector.load %arg3[%c0, %c0_2] : memref<4x128xf32, #tpu.memory_space<vmem>>, vector<4x128xf32>
    %3 = vector.shape_cast %2 : vector<4x128xf32> to vector<1x4x128xf32>
    %4 = vector.shape_cast %3 : vector<1x4x128xf32> to vector<1x4x128xf32>
    %5 = vector.broadcast %4 : vector<1x4x128xf32> to vector<14x4x128xf32>
    %c0_3 = arith.constant 0 : index
    %c1 = arith.constant 1 : index
    %c0_4 = arith.constant 0 : index
    %6 = vector.load %arg4[%c0_3, %c1, %c0_4] : memref<14x16x128xf32, #tpu.memory_space<vmem>>, vector<14x4x128xf32>
    tpu.vector_store %arg4[%c0_3, %c1, %c0_4], %5 {strides = array<i32>} : memref<14x16x128xf32, #tpu.memory_space<vmem>>, vector<14x4x128xf32>,
    %c0_i32_5 = arith.constant 0 : i32
    %c168_i32 = arith.constant 168 : i32
    %7 = arith.addi %c0_i32_5, %c168_i32 : i32
    %c1_i32_6 = arith.constant 1 : i32
    scf.for %arg6 = %c0_i32_5 to %7 step %c1_i32_6  : i32 {
      %c0_i32_7 = arith.constant 0 : i32
      %c0_i32_8 = arith.constant 0 : i32
      %c0_i32_9 = arith.constant 0 : i32
      %c0_i32_10 = arith.constant 0 : i32
      %8 = tpu.memref_slice %arg2[%c0_i32_7, %c0_i32_10] : memref<512x128xf32, #tpu.memory_space<any>> -> memref<1x128xf32, #tpu.memory_space<any>>
      %9 = tpu.memref_squeeze %8 : memref<1x128xf32, #tpu.memory_space<any>> -> memref<128xf32, #tpu.memory_space<any>>
      %c0_i32_11 = arith.constant 0 : i32
      %10 = tpu.memref_slice %arg4[%c0_i32_8, %c0_i32_9, %c0_i32_11] : memref<14x16x128xf32, #tpu.memory_space<vmem>> -> memref<1x1x128xf32, #tpu.memory_space<vmem>>
      %11 = tpu.memref_squeeze %10 : memref<1x1x128xf32, #tpu.memory_space<vmem>> -> memref<128xf32, #tpu.memory_space<vmem>>
      tpu.wait_dma2 semaphore(%arg5 : memref<!tpu.dma_semaphore, #tpu.memory_space<semaphore_mem>>) src(%9 : memref<128xf32, #tpu.memory_space<any>>) dst(%11 : memref<128xf32, #tpu.memory_space<vmem>>)
    }
    return
  }
  func.func @transform_1(%arg0: i32, %arg1: memref<14x16xi32, #tpu.memory_space<smem>>) -> (i32, i32) {
    %c0_i32 = arith.constant 0 : i32
    %c0_i32_0 = arith.constant 0 : i32
    %c0_i32_1 = arith.constant 0 : i32
    return %c0_i32, %c0_i32_0 : i32, i32
  }
  func.func @transform_2(%arg0: i32, %arg1: memref<14x16xi32, #tpu.memory_space<smem>>) -> (i32, i32, i32) {
    %c0_i32 = arith.constant 0 : i32
    %c0_i32_0 = arith.constant 0 : i32
    %c0_i32_1 = arith.constant 0 : i32
    return %arg0, %c0_i32, %c0_i32_0 : i32, i32, i32
  }
}

</mosaic_0001>

<bundles_post_ra>
// kernel: tpu_custom_call.1
= control target key start
LH: loop header
LB: loop body
LE: loop exit
PB: predicated region body
PF: predicated region fallthrough
CT: control target
= control target key end

     0   :  { %s737_s12 = smov [#allocation4]   ;;  %s982_s0 = inlined_call_operand.hbm [shape: s32[14,16], index: 0, kind: input, shape index: {}]   ;;  %s983_s1 = inlined_call_operand.hbm [shape: f32[512,128], index: 1, kind: input, shape index: {}]   ;;  %s984_s2 = inlined_call_operand.hbm [shape: f32[4,128], index: 2, kind: input, shape index: {}]   ;;  %s985_s3 = inlined_call_operand.hbm [shape: f32[14,16,128], index: 3, kind: output, shape index: {}]  }
   0x1   :  { %9 = dma.hbm_to_smem %s982_s0, 256, %s737_s12, [#allocation3] }
   0x2   :  { %721 = dma.done.wait [#allocation3], 256 }
   0x3   :  { %722 = vsyncadd [#allocation3], 4294967040 }
   0x4   :  { %11 = sfence }
   0x5   :  { %12 = vsyncpa [#allocation6], 0 }
   0x6   :  { %13 = vsyncpa [#allocation7], 0  ;;  %s738_s15 = smov [#allocation5]  }
   0x7   :  { %s20_s16 = sshll.u32 %s738_s15, 4  ;;  %s21_s16 = int_to_ptr.vmem [resolvable:$true] %s20_s16 }
   0x8   :  { %s417_s17 = scalar_lea.vmem %s21_s16, 64  ;;  %p422_p1 = scmp.lt.s32.totalorder %s21_s16, %s21_s16 }
   0x9   :  { %p418_p0 = scmp.ne.s32.totalorder %s21_s16, %s417_s17  ;;  %p423_p2 = scmp.lt.s32.totalorder %s417_s17, %s417_s17 }
   0xb   :  { %p424_p3 = por %p423_p2, %p422_p1 }
   0xd   :  { %p425_p4 = pnand %p424_p3, %p418_p0 }
   0xf   :  { %428 = shalt.err (!%p425_p4)
}
  0x10   :  { %23 = dma.hbm_to_vmem [thread:$0]  %s984_s2, 64, %s21_s16, [#allocation6]  }
  0x11   :  { %723 = dma.done.wait [#allocation6], 64  }
  0x12   :  { %724 = vsyncadd [#allocation6], 4294967232  ;;  %s768_s0 = smov 0  }
  0x13 LB: > { %s774_s20 = sshll.u32 %s731_s0, 7  ;;  %s356_s21 = sshll.u32 %s731_s0, 4  ;;  %s731_s0 = sphi %s768_s0, %s33_s0  }
  0x14   : > { %s36_s22 = sld [smem:[#allocation4 + %s774_s20]]  ;;  %s778_s23 = scalar_lea.vmem [#allocation8], %s356_s21 }
  0x15   : > { %s48_s2 = sshll.u32 %s778_s23, 4  ;;  %s52_s24 = sadd.s32 5, %s774_s20  ;;  %s782_s2 = int_to_ptr.vmem [resolvable:$true] %s48_s2 }
  0x16   : > { %s784_s25 = sld [smem:[#allocation4 + %s52_s24]]  ;;  %s293_s26 = scalar_lea.vmem %s778_s23, 5 [#allocation8] }
  0x17   : > { %s69_s27 = sadd.s32 6, %s774_s20  ;;  %s65_s28 = sshll.u32 %s293_s26, 4  ;;  %s790_s28 = int_to_ptr.vmem [resolvable:$true] %s65_s28 }
  0x18   : > { %s788_s29 = sld [smem:[#allocation4 + %s69_s27]]  ;;  %s298_s30 = scalar_lea.vmem %s778_s23, 6 [#allocation8] }
  0x19   : > { %s82_s5 = sshll.u32 %s298_s30, 4  ;;  %s801_s12 = scalar_lea.hbm %s983_s1, 8192  ;;  %s796_s5 = int_to_ptr.vmem [resolvable:$true] %s82_s5 }
  0x1a   : > { %s355_s4 = sshll.u32 %s36_s22, 4 }
  0x1b   : > { %s38_s8 = scalar_lea.hbm %s983_s1, %s355_s4 }
  0x1c   : > { %s429_s9 = scalar_lea.hbm %s38_s8, 16  ;;  %p432_p6 = scmp.lt.s32.totalorder %s38_s8, %s983_s1 }
  0x1d   : > { %p430_p5 = scmp.ne.s32.totalorder %s38_s8, %s429_s9  ;;  %p433_p7 = scmp.lt.s32.totalorder %s801_s12, %s429_s9 }
  0x1f   : > { %p434_p8 = por %p433_p7, %p432_p6 }
  0x21   : > { %p435_p9 = pnand %p434_p8, %p430_p5 }
  0x23   : > { %438 = shalt.err (!%p435_p9)  }
  0x24   : > { %s439_s15 = scalar_lea.vmem %s782_s2, 16  ;;  %s739_s16 = smov [#allocation8]  }
  0x25   : > { %p440_p10 = scmp.ne.s32.totalorder %s782_s2, %s439_s15  ;;  %s441_s17 = sshll.u32 %s739_s16, 4  ;;  %s809_s17 = int_to_ptr.vmem [resolvable:$false] %s441_s17 }
  0x26   : > { %s812_s18 = scalar_lea.vmem %s809_s17, 3584  ;;  %p444_p11 = scmp.lt.s32.totalorder %s782_s2, %s809_s17 }
  0x27   : > { %p445_p12 = scmp.lt.s32.totalorder %s812_s18, %s439_s15 }
  0x29   : > { %p446_p13 = por %p445_p12, %p444_p11 }
  0x2b   : > { %p447_p0 = pnand %p446_p13, %p440_p10 }
  0x2d   : > { %450 = shalt.err (!%p447_p0)  }
  0x2e   : > { %51 = dma.hbm_to_vmem [thread:$0]  %s38_s8, 16, %s782_s2, [#allocation2] }
  0x2f   : > { %s357_s19 = sshll.u32 %s784_s25, 4  ;;  %s86_s21 = sadd.s32 7, %s774_s20 }
  0x30   : > { %s55_s26 = scalar_lea.hbm %s983_s1, %s357_s19  ;;  %s359_s27 = sshll.u32 %s788_s29, 4 }
  0x31   : > { %s451_s30 = scalar_lea.hbm %s55_s26, 16  ;;  %p454_p2 = scmp.lt.s32.totalorder %s55_s26, %s983_s1 }
  0x32   : > { %p452_p1 = scmp.ne.s32.totalorder %s55_s26, %s451_s30  ;;  %p455_p3 = scmp.lt.s32.totalorder %s801_s12, %s451_s30 }
  0x34   : > { %p456_p4 = por %p455_p3, %p454_p2 }
  0x36   : > { %p457_p5 = pnand %p456_p4, %p452_p1 }
  0x38   : > { %460 = shalt.err (!%p457_p5)  }
  0x39   : > { %s461_s2 = scalar_lea.vmem %s790_s28, 16  ;;  %p466_p7 = scmp.lt.s32.totalorder %s790_s28, %s809_s17 }
  0x3a   : > { %p462_p6 = scmp.ne.s32.totalorder %s790_s28, %s461_s2  ;;  %p467_p8 = scmp.lt.s32.totalorder %s812_s18, %s461_s2 }
  0x3c   : > { %p468_p9 = por %p467_p8, %p466_p7 }
  0x3e   : > { %p469_p10 = pnand %p468_p9, %p462_p6 }
  0x40   : > { %472 = shalt.err (!%p469_p10)  }
  0x41   : > { %68 = dma.hbm_to_vmem [thread:$0]  %s55_s26, 16, %s790_s28, [#allocation2] }
  0x42   : > { %s72_s7 = scalar_lea.hbm %s983_s1, %s359_s27  ;;  %s87_s8 = sld [smem:[#allocation4 + %s86_s21]] }
  0x43   : > { %s473_s9 = scalar_lea.hbm %s72_s7, 16  ;;  %p476_p12 = scmp.lt.s32.totalorder %s72_s7, %s983_s1 }
  0x44   : > { %p474_p11 = scmp.ne.s32.totalorder %s72_s7, %s473_s9  ;;  %p477_p13 = scmp.lt.s32.totalorder %s801_s12, %s473_s9 }
  0x46   : > { %p478_p0 = por %p477_p13, %p476_p12 }
  0x48   : > { %p479_p1 = pnand %p478_p0, %p474_p11 }
  0x4a   : > { %482 = shalt.err (!%p479_p1)  }
  0x4b   : > { %s483_s28 = scalar_lea.vmem %s796_s5, 16  ;;  %p488_p3 = scmp.lt.s32.totalorder %s796_s5, %s809_s17 }
  0x4c   : > { %p484_p2 = scmp.ne.s32.totalorder %s796_s5, %s483_s28  ;;  %p489_p4 = scmp.lt.s32.totalorder %s812_s18, %s483_s28 }
  0x4e   : > { %p490_p5 = por %p489_p4, %p488_p3 }
  0x50   : > { %p491_p6 = pnand %p490_p5, %p484_p2 }
  0x52   : > { %494 = shalt.err (!%p491_p6)  }
  0x53   : > { %85 = dma.hbm_to_vmem [thread:$0]  %s72_s7, 16, %s796_s5, [#allocation2] }
  0x54   : > { %s303_s13 = scalar_lea.vmem %s778_s23, 7 [#allocation8]  ;;  %s103_s14 = sadd.s32 8, %s774_s20 }
  0x55   : > { %s99_s15 = sshll.u32 %s303_s13, 4  ;;  %s104_s16 = sld [smem:[#allocation4 + %s103_s14]]  ;;  %s100_s15 = int_to_ptr.vmem [resolvable:$true] %s99_s15 }
  0x56   : > { %s308_s19 = scalar_lea.vmem %s778_s23, 8 [#allocation8]  ;;  %s120_s22 = sadd.s32 9, %s774_s20 }
  0x57   : > { %s116_s21 = sshll.u32 %s308_s19, 4  ;;  %s361_s24 = sshll.u32 %s87_s8, 4  ;;  %s851_s21 = int_to_ptr.vmem [resolvable:$true] %s116_s21 }
  0x58   : > { %s89_s30 = scalar_lea.hbm %s983_s1, %s361_s24  ;;  %s856_s4 = sld [smem:[#allocation4 + %s120_s22]] }
  0x59   : > { %s495_s6 = scalar_lea.hbm %s89_s30, 16  ;;  %p498_p8 = scmp.lt.s32.totalorder %s89_s30, %s983_s1 }
  0x5a   : > { %p496_p7 = scmp.ne.s32.totalorder %s89_s30, %s495_s6  ;;  %p499_p9 = scmp.lt.s32.totalorder %s801_s12, %s495_s6 }
  0x5c   : > { %p500_p10 = por %p499_p9, %p498_p8 }
  0x5e   : > { %p501_p11 = pnand %p500_p10, %p496_p7 }
  0x60   : > { %504 = shalt.err (!%p501_p11)  }
  0x61   : > { %s505_s25 = scalar_lea.vmem %s100_s15, 16  ;;  %p510_p13 = scmp.lt.s32.totalorder %s100_s15, %s809_s17 }
  0x62   : > { %p506_p12 = scmp.ne.s32.totalorder %s100_s15, %s505_s25  ;;  %p511_p0 = scmp.lt.s32.totalorder %s812_s18, %s505_s25 }
  0x64   : > { %p512_p1 = por %p511_p0, %p510_p13 }
  0x66   : > { %p513_p2 = pnand %p512_p1, %p506_p12 }
  0x68   : > { %516 = shalt.err (!%p513_p2)  }
  0x69   : > { %102 = dma.hbm_to_vmem [thread:$0]  %s89_s30, 16, %s100_s15, [#allocation2] }
  0x6a   : > { %s363_s29 = sshll.u32 %s104_s16, 4  ;;  %s313_s7 = scalar_lea.vmem %s778_s23, 9 [#allocation8] }
  0x6b   : > { %s106_s10 = scalar_lea.hbm %s983_s1, %s363_s29  ;;  %s133_s11 = sshll.u32 %s313_s7, 4  ;;  %s134_s11 = int_to_ptr.vmem [resolvable:$true] %s133_s11 }
  0x6c   : > { %s517_s28 = scalar_lea.hbm %s106_s10, 16  ;;  %p520_p4 = scmp.lt.s32.totalorder %s106_s10, %s983_s1 }
  0x6d   : > { %p518_p3 = scmp.ne.s32.totalorder %s106_s10, %s517_s28  ;;  %p521_p5 = scmp.lt.s32.totalorder %s801_s12, %s517_s28 }
  0x6f   : > { %p522_p6 = por %p521_p5, %p520_p4 }
  0x71   : > { %p523_p7 = pnand %p522_p6, %p518_p3 }
  0x73   : > { %526 = shalt.err (!%p523_p7)  }
  0x74   : > { %s527_s15 = scalar_lea.vmem %s851_s21, 16  ;;  %p532_p9 = scmp.lt.s32.totalorder %s851_s21, %s809_s17 }
  0x75   : > { %p528_p8 = scmp.ne.s32.totalorder %s851_s21, %s527_s15  ;;  %p533_p10 = scmp.lt.s32.totalorder %s812_s18, %s527_s15 }
  0x77   : > { %p534_p11 = por %p533_p10, %p532_p9 }
  0x79   : > { %p535_p12 = pnand %p534_p11, %p528_p8 }
  0x7b   : > { %538 = shalt.err (!%p535_p12)  }
  0x7c   : > { %119 = dma.hbm_to_vmem [thread:$0]  %s106_s10, 16, %s851_s21, [#allocation2] }
  0x7d   : > { %s137_s16 = sadd.s32 10, %s774_s20  ;;  %s365_s19 = sshll.u32 %s856_s4, 4 }
  0x7e   : > { %s138_s22 = sld [smem:[#allocation4 + %s137_s16]]  ;;  %s123_s27 = scalar_lea.hbm %s983_s1, %s365_s19 }
  0x7f   : > { %s318_s30 = scalar_lea.vmem %s778_s23, 10 [#allocation8]  ;;  %s539_s6 = scalar_lea.hbm %s123_s27, 16 }
  0x80   : > { %p540_p13 = scmp.ne.s32.totalorder %s123_s27, %s539_s6  ;;  %p542_p0 = scmp.lt.s32.totalorder %s123_s27, %s983_s1 }
  0x81   : > { %p543_p1 = scmp.lt.s32.totalorder %s801_s12, %s539_s6 }
  0x83   : > { %p544_p2 = por %p543_p1, %p542_p0 }
  0x85   : > { %p545_p3 = pnand %p544_p2, %p540_p13 }
  0x87   : > { %548 = shalt.err (!%p545_p3)  }
  0x88   : > { %s549_s21 = scalar_lea.vmem %s134_s11, 16  ;;  %p554_p5 = scmp.lt.s32.totalorder %s134_s11, %s809_s17 }
  0x89   : > { %p550_p4 = scmp.ne.s32.totalorder %s134_s11, %s549_s21  ;;  %p555_p6 = scmp.lt.s32.totalorder %s812_s18, %s549_s21 }
  0x8b   : > { %p556_p7 = por %p555_p6, %p554_p5 }
  0x8d   : > { %p557_p8 = pnand %p556_p7, %p550_p4 }
  0x8f   : > { %560 = shalt.err (!%p557_p8)  }
  0x90   : > { %136 = dma.hbm_to_vmem [thread:$0]  %s123_s27, 16, %s134_s11, [#allocation2] }
  0x91   : > { %s150_s4 = sshll.u32 %s318_s30, 4  ;;  %s154_s25 = sadd.s32 11, %s774_s20  ;;  %s151_s4 = int_to_ptr.vmem [resolvable:$true] %s150_s4 }
  0x92   : > { %s155_s29 = sld [smem:[#allocation4 + %s154_s25]]  ;;  %s323_s7 = scalar_lea.vmem %s778_s23, 11 [#allocation8] }
  0x93   : > { %s171_s8 = sadd.s32 12, %s774_s20  ;;  %s367_s9 = sshll.u32 %s138_s22, 4 }
  0x94   : > { %s167_s10 = sshll.u32 %s323_s7, 4  ;;  %s140_s14 = scalar_lea.hbm %s983_s1, %s367_s9  ;;  %s896_s10 = int_to_ptr.vmem [resolvable:$true] %s167_s10 }
  0x95   : > { %s561_s15 = scalar_lea.hbm %s140_s14, 16  ;;  %p564_p10 = scmp.lt.s32.totalorder %s140_s14, %s983_s1 }
  0x96   : > { %p562_p9 = scmp.ne.s32.totalorder %s140_s14, %s561_s15  ;;  %p565_p11 = scmp.lt.s32.totalorder %s801_s12, %s561_s15 }
  0x98   : > { %p566_p12 = por %p565_p11, %p564_p10 }
  0x9a   : > { %p567_p13 = pnand %p566_p12, %p562_p9 }
  0x9c   : > { %570 = shalt.err (!%p567_p13)  }
  0x9d   : > { %s571_s19 = scalar_lea.vmem %s151_s4, 16  ;;  %p576_p1 = scmp.lt.s32.totalorder %s151_s4, %s809_s17 }
  0x9e   : > { %p572_p0 = scmp.ne.s32.totalorder %s151_s4, %s571_s19  ;;  %p577_p2 = scmp.lt.s32.totalorder %s812_s18, %s571_s19 }
  0xa0   : > { %p578_p3 = por %p577_p2, %p576_p1 }
  0xa2   : > { %p579_p4 = pnand %p578_p3, %p572_p0 }
  0xa4   : > { %582 = shalt.err (!%p579_p4)  }
  0xa5   : > { %153 = dma.hbm_to_vmem [thread:$0]  %s140_s14, 16, %s151_s4, [#allocation2] }
  0xa6   : > { %s172_s22 = sld [smem:[#allocation4 + %s171_s8]]  ;;  %s328_s24 = scalar_lea.vmem %s778_s23, 12 [#allocation8] }
  0xa7   : > { %s369_s26 = sshll.u32 %s155_s29, 4  ;;  %s184_s5 = sshll.u32 %s328_s24, 4  ;;  %s185_s5 = int_to_ptr.vmem [resolvable:$true] %s184_s5 }
  0xa8   : > { %s157_s6 = scalar_lea.hbm %s983_s1, %s369_s26 }
  0xa9   : > { %s583_s2 = scalar_lea.hbm %s157_s6, 16  ;;  %p586_p6 = scmp.lt.s32.totalorder %s157_s6, %s983_s1 }
  0xaa   : > { %p584_p5 = scmp.ne.s32.totalorder %s157_s6, %s583_s2  ;;  %p587_p7 = scmp.lt.s32.totalorder %s801_s12, %s583_s2 }
  0xac   : > { %p588_p8 = por %p587_p7, %p586_p6 }
  0xae   : > { %p589_p9 = pnand %p588_p8, %p584_p5 }
  0xb0   : > { %592 = shalt.err (!%p589_p9)  }
  0xb1   : > { %s593_s4 = scalar_lea.vmem %s896_s10, 16  ;;  %p598_p11 = scmp.lt.s32.totalorder %s896_s10, %s809_s17 }
  0xb2   : > { %p594_p10 = scmp.ne.s32.totalorder %s896_s10, %s593_s4  ;;  %p599_p12 = scmp.lt.s32.totalorder %s812_s18, %s593_s4 }
  0xb4   : > { %p600_p13 = por %p599_p12, %p598_p11 }
  0xb6   : > { %p601_p0 = pnand %p600_p13, %p594_p10 }
  0xb8   : > { %604 = shalt.err (!%p601_p0)  }
  0xb9   : > { %170 = dma.hbm_to_vmem [thread:$0]  %s157_s6, 16, %s896_s10, [#allocation2] }
  0xba   : > { %s188_s29 = sadd.s32 13, %s774_s20  ;;  %s333_s7 = scalar_lea.vmem %s778_s23, 13 [#allocation8] }
  0xbb   : > { %s189_s8 = sld [smem:[#allocation4 + %s188_s29]]  ;;  %s371_s9 = sshll.u32 %s172_s22, 4 }
  0xbc   : > { %s201_s28 = sshll.u32 %s333_s7, 4  ;;  %s174_s15 = scalar_lea.hbm %s983_s1, %s371_s9  ;;  %s202_s28 = int_to_ptr.vmem [resolvable:$true] %s201_s28 }
  0xbd   : > { %s205_s11 = sadd.s32 14, %s774_s20  ;;  %s605_s16 = scalar_lea.hbm %s174_s15, 16 }
  0xbe   : > { %p606_p1 = scmp.ne.s32.totalorder %s174_s15, %s605_s16  ;;  %p608_p2 = scmp.lt.s32.totalorder %s174_s15, %s983_s1 }
  0xbf   : > { %p609_p3 = scmp.lt.s32.totalorder %s801_s12, %s605_s16 }
  0xc1   : > { %p610_p4 = por %p609_p3, %p608_p2 }
  0xc3   : > { %p611_p5 = pnand %p610_p4, %p606_p1 }
  0xc5   : > { %614 = shalt.err (!%p611_p5)  }
  0xc6   : > { %s615_s10 = scalar_lea.vmem %s185_s5, 16  ;;  %p620_p7 = scmp.lt.s32.totalorder %s185_s5, %s809_s17 }
  0xc7   : > { %p616_p6 = scmp.ne.s32.totalorder %s185_s5, %s615_s10  ;;  %p621_p8 = scmp.lt.s32.totalorder %s812_s18, %s615_s10 }
  0xc9   : > { %p622_p9 = por %p621_p8, %p620_p7 }
  0xcb   : > { %p623_p10 = pnand %p622_p9, %p616_p6 }
  0xcd   : > { %626 = shalt.err (!%p623_p10)  }
  0xce   : > { %187 = dma.hbm_to_vmem [thread:$0]  %s174_s15, 16, %s185_s5, [#allocation2] }
  0xcf   : > { %s206_s22 = sld [smem:[#allocation4 + %s205_s11]]  ;;  %s338_s26 = scalar_lea.vmem %s778_s23, 14 [#allocation8] }
  0xd0   : > { %s222_s27 = sadd.s32 15, %s774_s20  ;;  %s373_s30 = sshll.u32 %s189_s8, 4 }
  0xd1   : > { %s218_s6 = sshll.u32 %s338_s26, 4  ;;  %s191_s25 = scalar_lea.hbm %s983_s1, %s373_s30  ;;  %s219_s6 = int_to_ptr.vmem [resolvable:$true] %s218_s6 }
  0xd2   : > { %s935_s4 = sld [smem:[#allocation4 + %s222_s27]]  ;;  %s627_s29 = scalar_lea.hbm %s191_s25, 16 }
  0xd3   : > { %p628_p11 = scmp.ne.s32.totalorder %s191_s25, %s627_s29  ;;  %p630_p12 = scmp.lt.s32.totalorder %s191_s25, %s983_s1 }
  0xd4   : > { %p631_p13 = scmp.lt.s32.totalorder %s801_s12, %s627_s29 }
  0xd6   : > { %p632_p0 = por %p631_p13, %p630_p12 }
  0xd8   : > { %p633_p1 = pnand %p632_p0, %p628_p11 }
  0xda   : > { %636 = shalt.err (!%p633_p1)  }
  0xdb   : > { %s637_s5 = scalar_lea.vmem %s202_s28, 16  ;;  %p642_p3 = scmp.lt.s32.totalorder %s202_s28, %s809_s17 }
  0xdc   : > { %p638_p2 = scmp.ne.s32.totalorder %s202_s28, %s637_s5  ;;  %p643_p4 = scmp.lt.s32.totalorder %s812_s18, %s637_s5 }
  0xde   : > { %p644_p5 = por %p643_p4, %p642_p3 }
  0xe0   : > { %p645_p6 = pnand %p644_p5, %p638_p2 }
  0xe2   : > { %648 = shalt.err (!%p645_p6)  }
  0xe3   : > { %204 = dma.hbm_to_vmem [thread:$0]  %s191_s25, 16, %s202_s28, [#allocation2] }
  0xe4   : > { %s343_s20 = scalar_lea.vmem %s778_s23, 15 [#allocation8]  ;;  %s375_s8 = sshll.u32 %s206_s22, 4 }
  0xe5   : > { %s235_s13 = sshll.u32 %s343_s20, 4  ;;  %s208_s11 = scalar_lea.hbm %s983_s1, %s375_s8  ;;  %s947_s13 = int_to_ptr.vmem [resolvable:$true] %s235_s13 }
  0xe6   : > { %s649_s16 = scalar_lea.hbm %s208_s11, 16  ;;  %p652_p8 = scmp.lt.s32.totalorder %s208_s11, %s983_s1 }
  0xe7   : > { %p650_p7 = scmp.ne.s32.totalorder %s208_s11, %s649_s16  ;;  %p653_p9 = scmp.lt.s32.totalorder %s801_s12, %s649_s16 }
  0xe9   : > { %p654_p10 = por %p653_p9, %p652_p8 }
  0xeb   : > { %p655_p11 = pnand %p654_p10, %p650_p7 }
  0xed   : > { %658 = shalt.err (!%p655_p11)  }
  0xee   : > { %s659_s28 = scalar_lea.vmem %s219_s6, 16  ;;  %p664_p13 = scmp.lt.s32.totalorder %s219_s6, %s809_s17 }
  0xef   : > { %p660_p12 = scmp.ne.s32.totalorder %s219_s6, %s659_s28  ;;  %p665_p0 = scmp.lt.s32.totalorder %s812_s18, %s659_s28 }
  0xf1   : > { %p666_p1 = por %p665_p0, %p664_p13 }
  0xf3   : > { %p667_p2 = pnand %p666_p1, %p660_p12 }
  0xf5   : > { %670 = shalt.err (!%p667_p2)  }
  0xf6   : > { %221 = dma.hbm_to_vmem [thread:$0]  %s208_s11, 16, %s219_s6, [#allocation2] }
  0xf7   : > { %s377_s23 = sshll.u32 %s935_s4, 4 }
  0xf8   : > { %s225_s26 = scalar_lea.hbm %s983_s1, %s377_s23 }
  0xf9   : > { %s671_s27 = scalar_lea.hbm %s225_s26, 16  ;;  %p674_p4 = scmp.lt.s32.totalorder %s225_s26, %s983_s1 }
  0xfa   : > { %p672_p3 = scmp.ne.s32.totalorder %s225_s26, %s671_s27  ;;  %p675_p5 = scmp.lt.s32.totalorder %s801_s12, %s671_s27 }
  0xfc   : > { %p676_p6 = por %p675_p5, %p674_p4 }
  0xfe   : > { %p677_p7 = pnand %p676_p6, %p672_p3 }
 0x100   : > { %680 = shalt.err (!%p677_p7)  }
 0x101   : > { %s681_s6 = scalar_lea.vmem %s947_s13, 16  ;;  %p686_p9 = scmp.lt.s32.totalorder %s947_s13, %s809_s17 }
 0x102   : > { %p682_p8 = scmp.ne.s32.totalorder %s947_s13, %s681_s6  ;;  %p687_p10 = scmp.lt.s32.totalorder %s812_s18, %s681_s6 }
 0x104   : > { %p688_p11 = por %p687_p10, %p686_p9 }
 0x106   : > { %p689_p12 = pnand %p688_p11, %p682_p8 }
 0x108   : > { %692 = shalt.err (!%p689_p12)  }
 0x109   : > { %238 = dma.hbm_to_vmem [thread:$0]  %s225_s26, 16, %s947_s13, [#allocation2] }
 0x10a   : > { %s33_s0 = sadd.s32 1, %s731_s0  }
 0x10b   : > { %p30_p13 = scmp.ge.s32.totalorder %s33_s0, 14  }
 0x10c   :  { %v239_v0 = vld [vmem:[#allocation5] sm:$0xf] (%p30_p13)  ;;  %s733_s12 = smov (%p30_p13), 0  }
 0x10d   :  { %32 = sbr.rel (!%p30_p13) target bundleno = 19 (0x13), region = 114  ;;  %240 = vst [vmem:[#allocation8 + $0x1] sm:$0xf] (%p30_p13), %v239_v0  ;;  %241 = vst [vmem:[#allocation8 + $0x11] sm:$0xf] (%p30_p13), %v239_v0 }
 0x10e   :  { %242 = vst [vmem:[#allocation8 + $0x21] sm:$0xf] (%p30_p13), %v239_v0  ;;  %243 = vst [vmem:[#allocation8 + $0x31] sm:$0xf] (%p30_p13), %v239_v0 }
 0x10f   :  { %244 = vst [vmem:[#allocation8 + $0x41] sm:$0xf] (%p30_p13), %v239_v0  ;;  %245 = vst [vmem:[#allocation8 + $0x51] sm:$0xf] (%p30_p13), %v239_v0 }
 0x110   :  { %246 = vst [vmem:[#allocation8 + $0x61] sm:$0xf] (%p30_p13), %v239_v0  ;;  %247 = vst [vmem:[#allocation8 + $0x71] sm:$0xf] (%p30_p13), %v239_v0 }
 0x111   :  { %248 = vst [vmem:[#allocation8 + $0x81] sm:$0xf] (%p30_p13), %v239_v0  ;;  %249 = vst [vmem:[#allocation8 + $0x91] sm:$0xf] (%p30_p13), %v239_v0 }
 0x112   :  { %250 = vst [vmem:[#allocation8 + $0xa1] sm:$0xf] %v239_v0  ;;  %251 = vst [vmem:[#allocation8 + $0xb1] sm:$0xf] %v239_v0 }
 0x113   :  { %252 = vst [vmem:[#allocation8 + $0xc1] sm:$0xf] %v239_v0  ;;  %253 = vst [vmem:[#allocation8 + $0xd1] sm:$0xf] %v239_v0 }
 0x114 LB: > { %725 = dma.done.wait [#allocation2], 16  ;;  %s735_s12 = sphi %s733_s12, %s259_s12  }
 0x115   : > { %726 = vsyncadd [#allocation2], 4294967280  ;;  %s259_s12 = sadd.s32 1, %s735_s12  }
 0x116   : > { %p256_p0 = scmp.ge.s32.totalorder %s259_s12, 168  }
 0x117   :  { %p694_p1 = scmp.ne.s32.totalorder (%p256_p0), %s809_s17, %s812_s18  ;;  %p698_p2 = scmp.lt.s32.totalorder (%p256_p0), %s809_s17, %s809_s17 }
 0x118   :  { %258 = sbr.rel (!%p256_p0) target bundleno = 276 (0x114), region = 125  ;;  %p699_p3 = scmp.lt.s32.totalorder (%p256_p0), %s812_s18, %s812_s18 }
 0x11a   :  { %p700_p4 = por (%p256_p0), %p699_p3, %p698_p2 }
 0x11c   :  { %p701_p5 = pnand (%p256_p0), %p700_p4, %p694_p1 }
 0x11e   :  { %704 = shalt.err (!%p701_p5)
}
 0x11f   :  { %s740_s1 = smov 128   ;;  %s741_s0 = smov 8  }
 0x120   :  { %273 = dma.vmem_to_hbm [thread:$0]  %s809_s17, 3584, %s985_s3, [#allocation7], %s740_s1, %s740_s1, %s741_s0  }
 0x121   :  { %727 = dma.done.wait [#allocation7], 3584  }
 0x122   :  { %728 = vsyncadd [#allocation7], 4294963712 }
 0x123   :  { %277 = vsyncpa [#allocation6], 1 }
 0x124   :  { %278 = vsyncpa [#allocation7], 1 }
 0x125   :  { %279 = vsyncmov [#allocation2] }
 0x128   :  { %s280_s4 = vpop.sfrf %279 }
 0x129   :  { %p379_p6 = scmp.ne.s32.totalorder %s280_s4, 0 }
 0x12b   :  { %284 = shalt.err (%p379_p6)  }

</bundles_post_ra>
